<compile_context>
chip_gen: v6e
topology: v6e:2x2x1
jax: 0.10.0
libtpu: 0.0.40
codegen_flags: <defaults>
</compile_context>

<pallas_src>
import math

import jax
import jax.numpy as jnp
from jax.experimental import pallas as pl
from jax.experimental.pallas import tpu as pltpu


def _make_concat_kernel(reps, widths):
    """Build the kernel specialized on (reps, feature widths) at trace time."""
    D0, D1, D2, D3 = widths
    aligned = all(d % 128 == 0 for d in widths)
    offs = [0, D0, D0 + D1, D0 + D1 + D2, D0 + D1 + D2 + D3]

    def kernel(x_ref,      # VMEM (T, D0)  input_stream rows
               ens_ref,    # VMEM (T, D1)  ensemble_stream rows
               rec_ref,    # VMEM (S, D2)  recursive default (resident)
               seed_ref,   # VMEM (S, D3)  mem seed (resident)
               out_ref):   # VMEM (T, D0+D1+D2+D3)
        rec = rec_ref[...]
        seed = seed_ref[...]
        if reps > 1:
            # Broadcast the per-sequence parameters across the row tile
            # in-kernel (tile_rows is a multiple of S, so this lines up).
            rec = jnp.tile(rec, (reps, 1))
            seed = jnp.tile(seed, (reps, 1))
        parts = (x_ref[...], ens_ref[...], rec, seed)

        if aligned:
            # 128-aligned lane offsets at production widths: four unmasked
            # full-vreg slice stores, no concatenated intermediate in vregs.
            for p, lo, hi in zip(parts, offs[:-1], offs[1:]):
                out_ref[:, lo:hi] = p.astype(out_ref.dtype)
        else:
            # Sub-128 widths (demo sizes): build the tile in vregs, one store.
            out_ref[...] = jnp.concatenate(
                [p.astype(out_ref.dtype) for p in parts], axis=-1)

    return kernel


def concat_startup(x, ens, rec_default, mem_seed, losses, *,
                   out_dtype=None, vmem_budget_bytes=24 << 20):
    """x: (B,S,D0)  ens: (B,S,D1)  rec_default: (1,S,D2)  mem_seed: (1,S,D3)
       losses: (4,) float32.
       Returns ((B, S, D0+D1+D2+D3) concatenated stream, scalar loss sum)."""
    B, S, D0 = x.shape
    D1 = ens.shape[-1]
    D2 = rec_default.shape[-1]
    D3 = mem_seed.shape[-1]
    Dtot = D0 + D1 + D2 + D3
    N = B * S

    if out_dtype is None:
        out_dtype = jnp.result_type(x.dtype, ens.dtype,
                                    rec_default.dtype, mem_seed.dtype)
    out_dtype = jnp.dtype(out_dtype)

    # merger.losses.sum() — hoisted out of the kernel (3 scalar adds).
    loss_sum = jnp.sum(losses)

    isz_x = x.dtype.itemsize
    isz_e = ens.dtype.itemsize
    isz_r = rec_default.dtype.itemsize
    isz_s = mem_seed.dtype.itemsize
    isz_o = out_dtype.itemsize

    # --- VMEM-budget-driven row tile ------------------------------------
    # Rows per grid step must be a multiple of S (so the per-sequence
    # broadcast params repeat exactly) and of the sublane-packing requirement
    # for the narrowest dtype involved.
    min_isz = int(min(isz_x, isz_e, isz_r, isz_s, isz_o))
    sub_req = {4: 8, 2: 16, 1: 32}.get(min_isz, 8)
    m = (S * sub_req) // math.gcd(S, sub_req)          # lcm(S, sub_req)

    # Double-buffered streamed bytes per row (x, ens, out); resident params
    # counted double-buffered too (conservative).
    per_row = 2 * (D0 * isz_x + D1 * isz_e) + 2 * Dtot * isz_o
    resident = 2 * S * (D2 * isz_r + D3 * isz_s)
    max_rows = max(m, (vmem_budget_bytes - resident) // max(per_row, 1))

    tile_rows = max(m, (max_rows // m) * m)
    if tile_rows >= N:
        tile_rows = N                       # single full-extent block
    grid = (pl.cdiv(N, tile_rows),)         # partial tail block handled by Pallas
    reps = tile_rows // S

    # Scoped-VMEM limit sized to the derived tile (+headroom), capped well
    # under v7x's 64 MiB physical per-TC VMEM.
    required = tile_rows * per_row + resident
    vmem_limit = int(min(max(int(required * 1.5) + (1 << 20), 16 << 20), 48 << 20))

    # Flatten (B, S) -> rows. Feature axis stays last (lanes).
    x_flat = x.reshape(N, D0)
    ens_flat = ens.reshape(N, D1)
    rec2d = rec_default.reshape(S, D2)      # fetched once, VMEM-resident
    seed2d = mem_seed.reshape(S, D3)        # (constant index_map)

    kernel = _make_concat_kernel(reps, (D0, D1, D2, D3))

    out_flat = pl.pallas_call(
        kernel,
        grid=grid,
        in_specs=[
            pl.BlockSpec((tile_rows, D0), lambda r: (r, 0)),   # input_stream
            pl.BlockSpec((tile_rows, D1), lambda r: (r, 0)),   # ensemble_stream
            pl.BlockSpec((S, D2), lambda r: (0, 0)),           # recursive default (resident)
            pl.BlockSpec((S, D3), lambda r: (0, 0)),           # mem seed (resident)
        ],
        out_specs=pl.BlockSpec((tile_rows, Dtot), lambda r: (r, 0)),
        out_shape=jax.ShapeDtypeStruct((N, Dtot), out_dtype),
        compiler_params=pltpu.CompilerParams(
            dimension_semantics=("parallel",),   # independent row tiles -> megacore OK
            vmem_limit_bytes=vmem_limit),
    )(x_flat, ens_flat, rec2d, seed2d)

    return out_flat.reshape(B, S, Dtot), loss_sum


if __name__ == "__main__":
    # Small shapes consistent with the module's forward (streams concatenated on dim=-1).
    B, S = 2, 8
    D_in, D_ens, D_rec, D_seed = 32, 16, 16, 32

    key = jax.random.PRNGKey(0)
    k_x, k_e, k_r, k_s = jax.random.split(key, 4)

    # Runtime streams.
    x = jax.random.normal(k_x, (B, S, D_in), dtype=jnp.float32)
    ens = jax.random.normal(k_e, (B, S, D_ens), dtype=jnp.float32)

    # Deterministic "parameters" from __init__: recursive_defaults + mem_seed.
    rec_default = jax.random.normal(k_r, (1, S, D_rec), dtype=jnp.float32)
    mem_seed = jax.random.normal(k_s, (1, S, D_seed), dtype=jnp.float32)

    # Per-stream scalar losses carried by the StreamTensors (deterministic).
    losses = jnp.array([0.1, 0.2, 0.3, 0.4], dtype=jnp.float32)

    out, loss_sum = concat_startup(x, ens, rec_default, mem_seed, losses)
    jax.block_until_ready(out)
    jax.block_until_ready(loss_sum)

    # Reference check (glue-level): concat along dim=-1 with broadcast of seed/default.
    ref = jnp.concatenate(
        [x, ens,
         jnp.broadcast_to(rec_default, (B, S, D_rec)),
         jnp.broadcast_to(mem_seed, (B, S, D_seed))], axis=-1)
    assert out.shape == (B, S, D_in + D_ens + D_rec + D_seed)
    assert jnp.allclose(out, ref)
    assert jnp.allclose(loss_sum, jnp.sum(losses))

    print("KERNEL_OK")
</pallas_src>

<mosaic_0001>
module attributes {stable_mosaic.version = 11 : i64} {
  func.func @kernel(%arg0: i32, %arg1: memref<16x32xf32, #tpu.memory_space<vmem>>, %arg2: memref<16x16xf32, #tpu.memory_space<vmem>>, %arg3: memref<8x16xf32, #tpu.memory_space<vmem>>, %arg4: memref<8x32xf32, #tpu.memory_space<vmem>>, %arg5: memref<16x96xf32, #tpu.memory_space<vmem>>) attributes {dimension_semantics = [#tpu.dimension_semantics<parallel>], iteration_bounds = array<i64: 1>, scalar_prefetch = 0 : i64, scratch_operands = 0 : i64, tpu.core_type = #tpu.core_type<tc>, window_params = [{transform_indices = @transform_0, window_bounds = array<i64: 16, 32>}, {transform_indices = @transform_1, window_bounds = array<i64: 16, 16>}, {pipeline_mode = #tpu.pipeline_mode<synchronous>, transform_indices = @transform_2, window_bounds = array<i64: 8, 16>}, {pipeline_mode = #tpu.pipeline_mode<synchronous>, transform_indices = @transform_3, window_bounds = array<i64: 8, 32>}, {transform_indices = @transform_4, window_bounds = array<i64: 16, 96>}]} {
    %c0 = arith.constant 0 : index
    %c0_0 = arith.constant 0 : index
    %0 = vector.load %arg3[%c0, %c0_0] : memref<8x16xf32, #tpu.memory_space<vmem>>, vector<8x16xf32>
    %c0_1 = arith.constant 0 : index
    %c0_2 = arith.constant 0 : index
    %1 = vector.load %arg4[%c0_1, %c0_2] : memref<8x32xf32, #tpu.memory_space<vmem>>, vector<8x32xf32>
    %2 = tpu.concatenate %0, %0 in 0 : vector<8x16xf32>, vector<8x16xf32> -> vector<16x16xf32>
    %3 = tpu.concatenate %1, %1 in 0 : vector<8x32xf32>, vector<8x32xf32> -> vector<16x32xf32>
    %c0_3 = arith.constant 0 : index
    %c0_4 = arith.constant 0 : index
    %4 = vector.load %arg1[%c0_3, %c0_4] : memref<16x32xf32, #tpu.memory_space<vmem>>, vector<16x32xf32>
    %c0_5 = arith.constant 0 : index
    %c0_6 = arith.constant 0 : index
    %5 = vector.load %arg2[%c0_5, %c0_6] : memref<16x16xf32, #tpu.memory_space<vmem>>, vector<16x16xf32>
    %6 = tpu.concatenate %4, %5, %2, %3 in 1 : vector<16x32xf32>, vector<16x16xf32>, vector<16x16xf32>, vector<16x32xf32> -> vector<16x96xf32>
    %c0_7 = arith.constant 0 : index
    %c0_8 = arith.constant 0 : index
    %7 = vector.load %arg5[%c0_7, %c0_8] : memref<16x96xf32, #tpu.memory_space<vmem>>, vector<16x96xf32>
    tpu.vector_store %arg5[%c0_7, %c0_8], %6 {strides = array<i32>} : memref<16x96xf32, #tpu.memory_space<vmem>>, vector<16x96xf32>,
    return
  }
  func.func @transform_0(%arg0: i32) -> (i32, i32) {
    %c0_i32 = arith.constant 0 : i32
    %c0_i32_0 = arith.constant 0 : i32
    return %arg0, %c0_i32 : i32, i32
  }
  func.func @transform_1(%arg0: i32) -> (i32, i32) {
    %c0_i32 = arith.constant 0 : i32
    %c0_i32_0 = arith.constant 0 : i32
    return %arg0, %c0_i32 : i32, i32
  }
  func.func @transform_2(%arg0: i32) -> (i32, i32) {
    %c0_i32 = arith.constant 0 : i32
    %c0_i32_0 = arith.constant 0 : i32
    %c0_i32_1 = arith.constant 0 : i32
    return %c0_i32, %c0_i32_0 : i32, i32
  }
  func.func @transform_3(%arg0: i32) -> (i32, i32) {
    %c0_i32 = arith.constant 0 : i32
    %c0_i32_0 = arith.constant 0 : i32
    %c0_i32_1 = arith.constant 0 : i32
    return %c0_i32, %c0_i32_0 : i32, i32
  }
  func.func @transform_4(%arg0: i32) -> (i32, i32) {
    %c0_i32 = arith.constant 0 : i32
    %c0_i32_0 = arith.constant 0 : i32
    return %arg0, %c0_i32 : i32, i32
  }
}

</mosaic_0001>

<bundles_post_ra>
// kernel: tpu_custom_call.1
= control target key start
LH: loop header
LB: loop body
LE: loop exit
PB: predicated region body
PF: predicated region fallthrough
CT: control target
= control target key end

     0   :  { %9 = vsyncpa [#allocation3], 0  ;;  %s299_s0 = inlined_call_operand.hbm [shape: f32[16,32], index: 0, kind: input, shape index: {}]   ;;  %s300_s1 = inlined_call_operand.hbm [shape: f32[16,16], index: 1, kind: input, shape index: {}]   ;;  %s301_s2 = inlined_call_operand.hbm [shape: f32[8,16], index: 2, kind: input, shape index: {}]   ;;  %s302_s3 = inlined_call_operand.hbm [shape: f32[8,32], index: 3, kind: input, shape index: {}]   ;;  %s303_s4 = inlined_call_operand.hbm [shape: f32[16,96], index: 4, kind: output, shape index: {}]  }
   0x1   :  { %10 = vsyncpa [#allocation6], 0 }
   0x2   :  { %11 = vsyncpa [#allocation9], 0 }
   0x3   :  { %12 = vsyncpa [#allocation4], 0  ;;  %s240_s15 = smov [#allocation5]   ;;  %s241_s17 = smov [#allocation2]  }
   0x4   :  { %s30_s16 = sshll.u32 %s240_s15, 4  ;;  %s18_s18 = sshll.u32 %s241_s17, 4  ;;  %s31_s16 = int_to_ptr.vmem [resolvable:$true] %s30_s16  ;;  %s19_s18 = int_to_ptr.vmem [resolvable:$true] %s18_s18 }
   0x5   :  { %s140_s19 = scalar_lea.vmem %s31_s16, 256  ;;  %p145_p1 = scmp.lt.s32.totalorder %s31_s16, %s31_s16 }
   0x6   :  { %p141_p0 = scmp.ne.s32.totalorder %s31_s16, %s140_s19  ;;  %p146_p2 = scmp.lt.s32.totalorder %s140_s19, %s140_s19 }
   0x8   :  { %p147_p3 = por %p146_p2, %p145_p1 }
   0xa   :  { %p148_p4 = pnand %p147_p3, %p141_p0 }
   0xc   :  { %151 = shalt.err (!%p148_p4)
}
   0xd   :  { %s242_s20 = smov 128   ;;  %s243_s21 = smov 8  }
   0xe   :  { %36 = dma.hbm_to_vmem [thread:$0]  %s300_s1, 256, %s31_s16, [#allocation6], %s242_s20, %s242_s20, %s243_s21  }
   0xf   :  { %s160_s24 = scalar_lea.vmem %s19_s18, 256  ;;  %p165_p6 = scmp.lt.s32.totalorder %s19_s18, %s19_s18 }
  0x10   :  { %p161_p5 = scmp.ne.s32.totalorder %s19_s18, %s160_s24  ;;  %p166_p7 = scmp.lt.s32.totalorder %s160_s24, %s160_s24 }
  0x12   :  { %p167_p8 = por %p166_p7, %p165_p6 }
  0x14   :  { %p168_p9 = pnand %p167_p8, %p161_p5 }
  0x16   :  { %171 = shalt.err (!%p168_p9)
}
  0x17   :  { %24 = dma.hbm_to_vmem [thread:$0]  %s299_s0, 256, %s19_s18, [#allocation3], %s242_s20, %s242_s20, %s243_s21  }
  0x18   :  { %s244_s27 = smov [#allocation7]   ;;  %s245_s29 = smov [#allocation8]  }
  0x19   :  { %s43_s28 = sshll.u32 %s244_s27, 4  ;;  %s53_s30 = sshll.u32 %s245_s29, 4  ;;  %s44_s28 = int_to_ptr.vmem [resolvable:$true] %s43_s28  ;;  %s54_s30 = int_to_ptr.vmem [resolvable:$true] %s53_s30 }
  0x1a   :  { %s180_s1 = scalar_lea.vmem %s44_s28, 128  ;;  %p185_p11 = scmp.lt.s32.totalorder %s44_s28, %s44_s28 }
  0x1b   :  { %p181_p10 = scmp.ne.s32.totalorder %s44_s28, %s180_s1  ;;  %p186_p12 = scmp.lt.s32.totalorder %s180_s1, %s180_s1 }
  0x1d   :  { %p187_p13 = por %p186_p12, %p185_p11 }
  0x1f   :  { %p188_p0 = pnand %p187_p13, %p181_p10 }
  0x21   :  { %191 = shalt.err (!%p188_p0)
}
  0x22   :  { %46 = dma.hbm_to_vmem [thread:$0]  %s301_s2, 128, %s44_s28, [#allocation6]  }
  0x23   :  { %s200_s7 = scalar_lea.vmem %s54_s30, 128  ;;  %p205_p2 = scmp.lt.s32.totalorder %s54_s30, %s54_s30 }
  0x24   :  { %p201_p1 = scmp.ne.s32.totalorder %s54_s30, %s200_s7  ;;  %p206_p3 = scmp.lt.s32.totalorder %s200_s7, %s200_s7 }
  0x26   :  { %p207_p4 = por %p206_p3, %p205_p2 }
  0x28   :  { %p208_p5 = pnand %p207_p4, %p201_p1 }
  0x2a   :  { %211 = shalt.err (!%p208_p5)
}
  0x2b   :  { %56 = dma.hbm_to_vmem [thread:$0]  %s302_s3, 128, %s54_s30, [#allocation9]  }
  0x2c   :  { %232 = dma.done.wait [#allocation3], 256  }
  0x2d   :  { %233 = vsyncadd [#allocation3], 4294967040 }
  0x2e   :  { %234 = dma.done.wait [#allocation6], 384  }
  0x2f   :  { %235 = vsyncadd [#allocation6], 4294966912 }
  0x30   :  { %236 = dma.done.wait [#allocation9], 128  }
  0x31   :  { %237 = vsyncadd [#allocation9], 4294967168  ;;  %v73_v0 = vld [vmem:[#allocation5] sm:$0xff]  ;;  %v69_v1 = vld [vmem:[#allocation7] sm:$0xff]  ;;  %s246_s2 = smov 32   ;;  %s247_s9 = smov 48  }
  0x32   :  { %77 = vrot.lane.b32.xlu0 %v73_v0, %s246_s2  ;;  %84 = vrot.lane.b32.xlu1 %v69_v1, %s247_s9  ;;  %v74_v2 = vld [vmem:[#allocation5 + $0x8] sm:$0xff]  ;;  %v70_v3 = vld [vmem:[#allocation8] sm:$0xff]  ;;  %s248_s10 = smov 64   ;;  %vm91_vm0 = vcmask 261120   ;;  %v71_v4 = vld [vmem:[#allocation2] sm:$0xff]  ;;  %vm94_vm1 = vcmask 392192  }
  0x33   :  { %v72_v8 = vld [vmem:[#allocation2 + $0x8] sm:$0xff]  ;;  %vm97_vm2 = vcmask 523264   ;;  %vm100_vm3 = vcmask 785408   ;;  %s249_s3 = smov [#allocation10]  }
  0x34   :  { %s108_s11 = sshll.u32 %s249_s3, 4  ;;  %s109_s11 = int_to_ptr.vmem [resolvable:$true] %s108_s11 }
  0x35   :  { %s212_s12 = scalar_lea.vmem %s109_s11, 256  ;;  %p217_p7 = scmp.lt.s32.totalorder %s109_s11, %s109_s11 }
  0x36   :  { %79 = vrot.lane.b32.xlu0 %v74_v2, %s246_s2  ;;  %88 = vrot.lane.b32.xlu1 %v70_v3, %s248_s10  ;;  %p213_p6 = scmp.ne.s32.totalorder %s109_s11, %s212_s12  ;;  %p218_p8 = scmp.lt.s32.totalorder %s212_s12, %s212_s12 }
  0x38   :  { %p219_p9 = por %p218_p8, %p217_p7 }
  0x3a   :  { %p220_p10 = pnand %p219_p9, %p213_p6 }
  0xa4   :  { %v78_v5 = vpop.permute.xlu0 %77  ;;  %v85_v6 = vpop.permute.xlu1 %84 }
  0xa5   :  { %v92_v7 = vsel %vm91_vm0, %v71_v4, %v78_v5 }
  0xa6   :  { %v95_v9 = vsel %vm94_vm1, %v92_v7, %v85_v6 }
  0xa8   :  { %v80_v10 = vpop.permute.xlu0 %79  ;;  %v89_v11 = vpop.permute.xlu1 %88 }
  0xa9   :  { %v93_v12 = vsel %vm91_vm0, %v72_v8, %v80_v10  ;;  %v98_v13 = vsel %vm97_vm2, %v95_v9, %v89_v11 }
  0xaa   :  { %v96_v14 = vsel %vm94_vm1, %v93_v12, %v85_v6  ;;  %101 = vst.msk [vmem:[#allocation10] sm:$0xff] %vm100_vm3, %v98_v13 }
  0xab   :  { %v99_v15 = vsel %vm97_vm2, %v96_v14, %v89_v11 }
  0xac   :  { %102 = vst.msk [vmem:[#allocation10 + $0x8] sm:$0xff] %vm100_vm3, %v99_v15 }
  0xad   :  { %223 = shalt.err (!%p220_p10)
}
  0xae   :  { %114 = dma.vmem_to_hbm [thread:$0]  %s109_s11, 256, %s303_s4, [#allocation4], %s242_s20, %s242_s20, %s243_s21  }
  0xaf   :  { %238 = dma.done.wait [#allocation4], 256  }
  0xb0   :  { %239 = vsyncadd [#allocation4], 4294967040 }
  0xb1   :  { %118 = vsyncpa [#allocation3], 1 }
  0xb2   :  { %119 = vsyncpa [#allocation6], 1 }
  0xb3   :  { %120 = vsyncpa [#allocation9], 1 }
  0xb4   :  { %121 = vsyncpa [#allocation4], 1 }

</bundles_post_ra>
